<compile_context>
chip_gen: v7x
topology: tpu7x:2x2x1
jax: 0.10.0
libtpu: 0.0.40
codegen_flags: <defaults>
</compile_context>

<pallas_src>
import functools

import jax
import jax.numpy as jnp
from jax.experimental import pallas as pl
from jax.experimental.pallas import tpu as pltpu


def _sublane_multiple(dtype):
    """Row alignment keeping packed-sublane vregs / stores unmasked."""
    return {4: 8, 2: 16, 1: 32}.get(jnp.dtype(dtype).itemsize, 8)


def _pick_tile(rows, sub, requested, cap):
    """Largest sublane-aligned row tile that divides `rows`, <= cap.

    Prefers >= 2 grid steps (so both v7x TensorCores get work); falls back to
    a single full-array block when rows is not sublane-aligned (allowed since
    block_shape == array shape)."""
    if rows % sub != 0 or rows <= sub:
        return rows
    target = min(requested, cap, rows)
    if target >= rows and rows >= 2 * sub:
        target = rows // 2          # keep >=2 steps for v7x megacore split
    target = max(sub, (target // sub) * sub)
    t = target
    while t > sub and rows % t != 0:
        t -= sub
    return t if rows % t == 0 else rows


# ----------------------------------------------------------------------------
# Path 2: pipelined, lane-dense scale kernel (default Pallas path).
# ----------------------------------------------------------------------------
def _scale_kernel(mask_ref, l1_ref, l2_ref, l3_ref, o1_ref, o2_ref, o3_ref):
    """out_k = loss_k if mask[k] else 0, one (tile, 128) block per grid step."""
    for k, (l_ref, o_ref) in enumerate(
            ((l1_ref, o1_ref), (l2_ref, o2_ref), (l3_ref, o3_ref))):
        x = l_ref[...]
        # Select, not multiply: no f32 promotion for bf16/f16 losses.
        o_ref[...] = jnp.where(mask_ref[k] != 0, x, jnp.zeros_like(x))


def _loss_dropout_scaled(mask_i32, losses, *, tile_rows):
    shape = losses[0].shape
    dtype = losses[0].dtype
    n_elems = losses[0].size
    assert n_elems % 128 == 0       # (rows, 128) view is a free bitcast

    rows = n_elems // 128
    sub = _sublane_multiple(dtype)
    itemsize = jnp.dtype(dtype).itemsize

    # VMEM cap: 3 inputs + 3 outputs, double-buffered, (tile, 128) each.
    # 24 MiB budget stays inside the 32 MiB scoped limit on every generation
    # (v7x included, 64 MiB physical).
    vmem_budget = 24 * 1024 * 1024
    cap = max(sub, vmem_budget // (12 * 128 * itemsize))
    tile = _pick_tile(rows, sub, tile_rows, cap)

    blocks = tuple(x.reshape(rows, 128) for x in losses)   # free view, no copy

    def in_spec(k):
        # Dropped task (mask[k] == 0): pin its block index at 0 so the
        # pipeline stops issuing new HBM->VMEM input DMAs for it.
        return pl.BlockSpec((tile, 128), lambda i, mask, k=k: (i * mask[k], 0))

    out_spec = pl.BlockSpec((tile, 128), lambda i, mask: (i, 0))

    outs = pl.pallas_call(
        _scale_kernel,
        out_shape=tuple(jax.ShapeDtypeStruct((rows, 128), dtype)
                        for _ in range(3)),
        grid_spec=pltpu.PrefetchScalarGridSpec(
            num_scalar_prefetch=1,          # mask lands in SMEM before the grid
            grid=(rows // tile,),
            in_specs=[in_spec(0), in_spec(1), in_spec(2)],
            out_specs=[out_spec, out_spec, out_spec],
        ),
        compiler_params=pltpu.CompilerParams(
            dimension_semantics=("parallel",),   # v7x: both TCs split row tiles
            vmem_limit_bytes=32 * 1024 * 1024,
        ),
    )(mask_i32, *blocks)

    return tuple(o.reshape(shape) for o in outs)


# ----------------------------------------------------------------------------
# Path 3: in-place kernel — outputs aliased to inputs; only dropped tasks get
# any HBM traffic (a pipelined zero-fill write).
# ----------------------------------------------------------------------------
def _zero_dropped_kernel(mask_ref, l1_hbm, l2_hbm, l3_hbm,
                         o1_hbm, o2_hbm, o3_hbm, zero_buf, sem,
                         *, zero_rows, depth):
    del l1_hbm, l2_hbm, l3_hbm          # aliased: data already lives in o*_hbm
    zero_buf[...] = jnp.zeros_like(zero_buf)

    for k, o_ref in enumerate((o1_hbm, o2_hbm, o3_hbm)):
        @pl.when(mask_ref[k] == 0)      # dropped task -> overwrite with zeros
        def _(o_ref=o_ref):
            rows = o_ref.shape[0]
            n_full = rows // zero_rows
            rem = rows - n_full * zero_rows

            def cp(r, slot):
                return pltpu.make_async_copy(
                    zero_buf,
                    o_ref.at[pl.ds(r * zero_rows, zero_rows), :],
                    sem.at[slot])

            # depth-deep pipelined zero-fill (source is read-only VMEM,
            # destinations are disjoint -> keep `depth` writes in flight).
            n_prime = min(depth, n_full)
            for r in range(n_prime):                        # static prologue
                cp(r, r % depth).start()
            if n_full > depth:
                @pl.loop(depth, n_full)
                def _(r):
                    cp(r - depth, r % depth).wait()
                    cp(r, r % depth).start()
            for r in range(max(0, n_full - depth), n_full):  # static drain
                cp(r, r % depth).wait()

            if rem > 0:                                      # ragged tail
                tail = pltpu.make_async_copy(
                    zero_buf.at[:rem, :],
                    o_ref.at[pl.ds(n_full * zero_rows, rem), :],
                    sem.at[0])
                tail.start()
                tail.wait()


def _loss_dropout_inplace(mask_i32, losses, *, zero_rows=2048, depth=4):
    dtype = losses[0].dtype
    rows = losses[0].size // 128
    sub = _sublane_multiple(dtype)
    zero_rows = max(sub, min(zero_rows, ((rows + sub - 1) // sub) * sub))
    views = tuple(x.reshape(rows, 128) for x in losses)     # free bitcast views

    outs = pl.pallas_call(
        functools.partial(_zero_dropped_kernel,
                          zero_rows=zero_rows, depth=depth),
        out_shape=tuple(jax.ShapeDtypeStruct(v.shape, v.dtype) for v in views),
        in_specs=[pl.BlockSpec(memory_space=pltpu.SMEM)]       # mask
                 + [pl.BlockSpec(memory_space=pl.ANY)] * 3,    # losses stay in HBM
        out_specs=tuple(pl.BlockSpec(memory_space=pl.ANY) for _ in range(3)),
        scratch_shapes=[pltpu.VMEM((zero_rows, 128), dtype),
                        pltpu.SemaphoreType.DMA((depth,))],
        input_output_aliases={1: 0, 2: 1, 3: 2},   # output_k reuses input_k's buffer
    )(mask_i32, *views)
    return tuple(o.reshape(x.shape) for o, x in zip(outs, losses))


# ----------------------------------------------------------------------------
# Wrapper with the same forward semantics as LossDropout(n, n_tasks).
# ----------------------------------------------------------------------------
def loss_dropout(loss1, loss2, loss3, key, n=1, n_tasks=3, *,
                 tile_rows=2048, in_place=False, min_pallas_elems=1 << 18):
    """Returns (out1, out2, out3, dropout_mask_f32).  Pass a fresh key per call."""
    assert 0 <= n < n_tasks
    assert n_tasks == 3, "kernel is specialized for 3 tasks (like the module)"
    assert tile_rows > 0

    # dropout = ones(n_tasks); dropout[:n] = 0; dropout = dropout[randperm(...)]
    base = (jnp.arange(n_tasks) >= n).astype(jnp.int32)
    perm = jax.random.permutation(key, n_tasks)
    mask_i32 = base[perm]                      # (3,) of {0, 1}
    mask_f32 = mask_i32.astype(jnp.float32)

    losses = (loss1, loss2, loss3)
    uniform = all(l.shape == loss1.shape and l.dtype == loss1.dtype
                  for l in losses)
    lane_dense = loss1.size % 128 == 0         # (rows,128) view is free

    # Tiny / mismatched / non-lane-dense: fused XLA select is already at the
    # HBM roofline and avoids any pad copies or kernel dispatch overhead.
    if not (uniform and lane_dense and loss1.size >= min_pallas_elems):
        outs = tuple(jnp.where(mask_i32[k] != 0, l, jnp.zeros_like(l))
                     for k, l in enumerate(losses))
        return (*outs, mask_f32)

    if in_place:
        # Aliased zero-fill of dropped tasks only (~n*N HBM bytes vs ~5N).
        # Only a real win when the caller donates the loss buffers under
        # jax.jit(donate_argnums=...); without donation XLA inserts defensive
        # copies (results stay correct, just not cheaper than the scaled path).
        outs = _loss_dropout_inplace(mask_i32, losses)
        return (*outs, mask_f32)

    outs = _loss_dropout_scaled(mask_i32, losses, tile_rows=tile_rows)
    return (*outs, mask_f32)


if __name__ == "__main__":
    root = jax.random.PRNGKey(0)
    k1, k2, k3, kperm = jax.random.split(root, 4)

    # Small but lane-dense losses: (64, 256) = 16384 elems each -> (128, 128)
    # free lane-dense view; tile_rows=64 gives 2 pipelined grid steps.
    shape = (64, 256)
    loss1 = jax.random.normal(k1, shape, dtype=jnp.float32)
    loss2 = jax.random.normal(k2, shape, dtype=jnp.float32)
    loss3 = jax.random.normal(k3, shape, dtype=jnp.float32)

    # --- default Pallas path (pipelined, lane-dense, mask-aware index_map) ---
    o1, o2, o3, mask = loss_dropout(loss1, loss2, loss3, kperm, n=1,
                                    tile_rows=64, min_pallas_elems=4096)
    jax.block_until_ready((o1, o2, o3))
    refs = (loss1 * mask[0], loss2 * mask[1], loss3 * mask[2])
    assert all(jnp.allclose(o, r) for o, r in zip((o1, o2, o3), refs))
    assert int(mask.sum()) == 2            # exactly n=1 task dropped

    # --- bf16 losses: exercises dtype-aware (16-row) sublane alignment -------
    b1, b2, b3 = (x.astype(jnp.bfloat16) for x in (loss1, loss2, loss3))
    q1, q2, q3, maskb = loss_dropout(b1, b2, b3, kperm, n=1,
                                     tile_rows=64, min_pallas_elems=4096)
    jax.block_until_ready((q1, q2, q3))
    assert all(jnp.allclose(q.astype(jnp.float32),
                            b.astype(jnp.float32) * m)
               for q, b, m in zip((q1, q2, q3), (b1, b2, b3),
                                  (maskb[0], maskb[1], maskb[2])))

    # --- in-place Pallas path (aliased outputs, pipelined zero-fill) ---------
    # Reusing loss1..3 afterwards is valid only because donation is NOT enabled
    # here; with jit donation the inputs would be consumed.
    p1, p2, p3, mask2 = loss_dropout(loss1, loss2, loss3, kperm, n=1,
                                     in_place=True, min_pallas_elems=4096)
    jax.block_until_ready((p1, p2, p3))
    assert all(jnp.allclose(p, r) for p, r in zip((p1, p2, p3), refs))

    # --- tiny-loss fallback (fused XLA select, no Pallas call) ---------------
    t1 = jax.random.normal(k1, (2, 16), dtype=jnp.float32)
    t2 = jax.random.normal(k2, (2, 16), dtype=jnp.float32)
    t3 = jax.random.normal(k3, (2, 16), dtype=jnp.float32)
    s1, s2, s3, mask3 = loss_dropout(t1, t2, t3, kperm, n=1)
    jax.block_until_ready((s1, s2, s3))
    assert all(jnp.allclose(s, t * m) for s, t, m in
               zip((s1, s2, s3), (t1, t2, t3), (mask3[0], mask3[1], mask3[2])))

    print("KERNEL_OK")
</pallas_src>

<mosaic_0001>
module attributes {stable_mosaic.version = 11 : i64} {
  func.func @_scale_kernel(%arg0: i32, %arg1: memref<3xi32, #tpu.memory_space<smem>>, %arg2: memref<64x128xf32, #tpu.memory_space<vmem>>, %arg3: memref<64x128xf32, #tpu.memory_space<vmem>>, %arg4: memref<64x128xf32, #tpu.memory_space<vmem>>, %arg5: memref<64x128xf32, #tpu.memory_space<vmem>>, %arg6: memref<64x128xf32, #tpu.memory_space<vmem>>, %arg7: memref<64x128xf32, #tpu.memory_space<vmem>>) attributes {dimension_semantics = [#tpu.dimension_semantics<parallel>], iteration_bounds = array<i64: 2>, scalar_prefetch = 1 : i64, scratch_operands = 0 : i64, tpu.core_type = #tpu.core_type<tc>, window_params = [{transform_indices = @transform_0, window_bounds = array<i64: 64, 128>}, {transform_indices = @transform_1, window_bounds = array<i64: 64, 128>}, {transform_indices = @transform_2, window_bounds = array<i64: 64, 128>}, {transform_indices = @transform_3, window_bounds = array<i64: 64, 128>}, {transform_indices = @transform_4, window_bounds = array<i64: 64, 128>}, {transform_indices = @transform_5, window_bounds = array<i64: 64, 128>}]} {
    %c0 = arith.constant 0 : index
    %c0_0 = arith.constant 0 : index
    %0 = vector.load %arg2[%c0, %c0_0] : memref<64x128xf32, #tpu.memory_space<vmem>>, vector<64x128xf32>
    %c0_1 = arith.constant 0 : index
    %1 = memref.load %arg1[%c0_1] : memref<3xi32, #tpu.memory_space<smem>>
    %c0_i32 = arith.constant 0 : i32
    %2 = arith.cmpi ne, %1, %c0_i32 : i32
    %cst = arith.constant 0.000000e+00 : f32
    %3 = vector.broadcast %cst : f32 to vector<64x128xf32>
    %4 = arith.select %2, %0, %3 : vector<64x128xf32>
    %c0_2 = arith.constant 0 : index
    %c0_3 = arith.constant 0 : index
    %5 = vector.load %arg5[%c0_2, %c0_3] : memref<64x128xf32, #tpu.memory_space<vmem>>, vector<64x128xf32>
    tpu.vector_store %arg5[%c0_2, %c0_3], %4 {strides = array<i32>} : memref<64x128xf32, #tpu.memory_space<vmem>>, vector<64x128xf32>,
    %c0_4 = arith.constant 0 : index
    %c0_5 = arith.constant 0 : index
    %6 = vector.load %arg3[%c0_4, %c0_5] : memref<64x128xf32, #tpu.memory_space<vmem>>, vector<64x128xf32>
    %c1 = arith.constant 1 : index
    %7 = memref.load %arg1[%c1] : memref<3xi32, #tpu.memory_space<smem>>
    %c0_i32_6 = arith.constant 0 : i32
    %8 = arith.cmpi ne, %7, %c0_i32_6 : i32
    %cst_7 = arith.constant 0.000000e+00 : f32
    %9 = vector.broadcast %cst_7 : f32 to vector<64x128xf32>
    %10 = arith.select %8, %6, %9 : vector<64x128xf32>
    %c0_8 = arith.constant 0 : index
    %c0_9 = arith.constant 0 : index
    %11 = vector.load %arg6[%c0_8, %c0_9] : memref<64x128xf32, #tpu.memory_space<vmem>>, vector<64x128xf32>
    tpu.vector_store %arg6[%c0_8, %c0_9], %10 {strides = array<i32>} : memref<64x128xf32, #tpu.memory_space<vmem>>, vector<64x128xf32>,
    %c0_10 = arith.constant 0 : index
    %c0_11 = arith.constant 0 : index
    %12 = vector.load %arg4[%c0_10, %c0_11] : memref<64x128xf32, #tpu.memory_space<vmem>>, vector<64x128xf32>
    %c2 = arith.constant 2 : index
    %13 = memref.load %arg1[%c2] : memref<3xi32, #tpu.memory_space<smem>>
    %c0_i32_12 = arith.constant 0 : i32
    %14 = arith.cmpi ne, %13, %c0_i32_12 : i32
    %cst_13 = arith.constant 0.000000e+00 : f32
    %15 = vector.broadcast %cst_13 : f32 to vector<64x128xf32>
    %16 = arith.select %14, %12, %15 : vector<64x128xf32>
    %c0_14 = arith.constant 0 : index
    %c0_15 = arith.constant 0 : index
    %17 = vector.load %arg7[%c0_14, %c0_15] : memref<64x128xf32, #tpu.memory_space<vmem>>, vector<64x128xf32>
    tpu.vector_store %arg7[%c0_14, %c0_15], %16 {strides = array<i32>} : memref<64x128xf32, #tpu.memory_space<vmem>>, vector<64x128xf32>,
    return
  }
  func.func @transform_0(%arg0: i32, %arg1: memref<3xi32, #tpu.memory_space<smem>>) -> (i32, i32) {
    %c0 = arith.constant 0 : index
    %0 = memref.load %arg1[%c0] : memref<3xi32, #tpu.memory_space<smem>>
    %1 = arith.muli %arg0, %0 : i32
    %c0_i32 = arith.constant 0 : i32
    %c0_i32_0 = arith.constant 0 : i32
    return %1, %c0_i32 : i32, i32
  }
  func.func @transform_1(%arg0: i32, %arg1: memref<3xi32, #tpu.memory_space<smem>>) -> (i32, i32) {
    %c1 = arith.constant 1 : index
    %0 = memref.load %arg1[%c1] : memref<3xi32, #tpu.memory_space<smem>>
    %1 = arith.muli %arg0, %0 : i32
    %c0_i32 = arith.constant 0 : i32
    %c0_i32_0 = arith.constant 0 : i32
    return %1, %c0_i32 : i32, i32
  }
  func.func @transform_2(%arg0: i32, %arg1: memref<3xi32, #tpu.memory_space<smem>>) -> (i32, i32) {
    %c2 = arith.constant 2 : index
    %0 = memref.load %arg1[%c2] : memref<3xi32, #tpu.memory_space<smem>>
    %1 = arith.muli %arg0, %0 : i32
    %c0_i32 = arith.constant 0 : i32
    %c0_i32_0 = arith.constant 0 : i32
    return %1, %c0_i32 : i32, i32
  }
  func.func @transform_3(%arg0: i32, %arg1: memref<3xi32, #tpu.memory_space<smem>>) -> (i32, i32) {
    %c0_i32 = arith.constant 0 : i32
    %c0_i32_0 = arith.constant 0 : i32
    return %arg0, %c0_i32 : i32, i32
  }
  func.func @transform_4(%arg0: i32, %arg1: memref<3xi32, #tpu.memory_space<smem>>) -> (i32, i32) {
    %c0_i32 = arith.constant 0 : i32
    %c0_i32_0 = arith.constant 0 : i32
    return %arg0, %c0_i32 : i32, i32
  }
  func.func @transform_5(%arg0: i32, %arg1: memref<3xi32, #tpu.memory_space<smem>>) -> (i32, i32) {
    %c0_i32 = arith.constant 0 : i32
    %c0_i32_0 = arith.constant 0 : i32
    return %arg0, %c0_i32 : i32, i32
  }
}

</mosaic_0001>

<bundles_post_ra>
// kernel: tpu_custom_call.1
= control target key start
LH: loop header
LB: loop body
LE: loop exit
PB: predicated region body
PF: predicated region fallthrough
CT: control target
= control target key end

     0   :  { %s1876_s0 = inlined_call_operand.hbm [shape: s32[3], index: 0, kind: input, shape index: {}]   ;;  %s1877_s1 = inlined_call_operand.hbm [shape: f32[128,128], index: 1, kind: input, shape index: {}]   ;;  %s1878_s2 = inlined_call_operand.hbm [shape: f32[128,128], index: 2, kind: input, shape index: {}]   ;;  %s1879_s3 = inlined_call_operand.hbm [shape: f32[128,128], index: 3, kind: input, shape index: {}]   ;;  %s1880_s4 = inlined_call_operand.hbm [shape: f32[128,128], index: 4, kind: output, shape index: {0}]   ;;  %s1881_s5 = inlined_call_operand.hbm [shape: f32[128,128], index: 5, kind: output, shape index: {1}]   ;;  %s1882_s6 = inlined_call_operand.hbm [shape: f32[128,128], index: 6, kind: output, shape index: {2}]  }
   0x1   :  { %1905 = sst [smem:[#allocation29_spill]] %s1877_s1  ;;  %s952_s23 = scalar_lea.hbm %s1876_s0, 16 }
   0x2   :  { %1906 = sst [smem:[#allocation30_spill]] %s1878_s2  ;;  %p953_p0 = scmp.ne.s32.totalorder %s1876_s0, %s952_s23 }
   0x3   :  { %1907 = sst [smem:[#allocation31_spill]] %s1879_s3  ;;  %p956_p1 = scmp.lt.u32.totalorder %s952_s23, %s1876_s0 }
   0x4   :  { %1908 = sst [smem:[#allocation32_spill]] %s1880_s4 }
   0x5   :  { %1909 = sst [smem:[#allocation33_spill]] %s1882_s6  ;;  %p958_p2 = pnand %p956_p1, %p953_p0 }
   0x7   :  { %961 = shalt.err (!%p958_p2)  }
   0x8   :  { %s1262_s28 = smov [#allocation3]  }
   0x9   :  { %13 = dma.hbm_to_smem %s1876_s0, 16, %s1262_s28, [#allocation2] }
   0xa   :  { %1188 = dma.done.wait [#allocation2], 16 }
   0xb   :  { %1189 = vsyncadd [#allocation2], 4294967280 }
   0xc   :  { %15 = sfence }
   0xd   :  { %16 = vsyncpa [#allocation5], 0 }
   0xe   :  { %18 = vsyncpa [#allocation5 + $0x1], 0 }
   0xf   :  { %19 = vsyncpa [#allocation8], 0 }
  0x10   :  { %21 = vsyncpa [#allocation8 + $0x1], 0 }
  0x11   :  { %22 = vsyncpa [#allocation6], 0 }
  0x12   :  { %24 = vsyncpa [#allocation6 + $0x1], 0 }
  0x13   :  { %25 = vsyncpa [#allocation12], 0 }
  0x14   :  { %27 = vsyncpa [#allocation12 + $0x1], 0  ;;  %s1320_s7 = smov 0   ;;  %s1322_s8 = smov 0  }
  0x15   :  { %s1324_s9 = smov 0   ;;  %s1326_s10 = smov 0  }
  0x16   :  { %s1328_s0 = smov 0   ;;  %s1330_s11 = smov 0  }
  0x17   :  { %s1332_s12 = smov 0   ;;  %s1334_s13 = smov 0  }
  0x18   :  { %s1336_s14 = smov 0   ;;  %s1338_s15 = smov 0  }
  0x19   :  { %s1340_s16 = smov 0   ;;  %s1342_s17 = smov 0  }
  0x1a   :  { %s1344_s18 = smov 0  }
  0x1b LB: > { %1910 = sst [smem:[#allocation20_spill]] %s1212_s7  ;;  %s1384_s19 = sadd.s32 4294967295, %s1260_s18   ;;  %s1260_s18 = sphi %s1344_s18, %s1976_s18   ;;  %s1256_s17 = sphi %s1342_s17, %s1975_s17   ;;  %s1252_s16 = sphi %s1340_s16, %s1974_s16   ;;  %s1248_s15 = sphi %s1338_s15, %s1973_s15   ;;  %s1244_s14 = sphi %s1336_s14, %s1972_s14   ;;  %s1240_s13 = sphi %s1334_s13, %s1971_s13   ;;  %s1236_s12 = sphi %s1332_s12, %s1970_s12   ;;  %s1232_s11 = sphi %s1330_s11, %s1969_s11   ;;  %s1228_s0 = sphi %s1328_s0, %s1968_s0   ;;  %s1224_s10 = sphi %s1326_s10, %s1967_s10   ;;  %s1220_s9 = sphi %s1324_s9, %s1960_s9   ;;  %s1216_s8 = sphi %s1322_s8, %s1966_s8   ;;  %s1212_s7 = sphi %s1320_s7, %s1965_s7  }
  0x1c   : > { %1911 = sst [smem:[#allocation21_spill]] %s1220_s9  ;;  %s1883_s20 = sadd.s32 4294967294, %s1260_s18  }
  0x1d   : > { %1912 = sst [smem:[#allocation22_spill]] %s1244_s14  ;;  %s1388_s21 = sadd.s32 1, %s1260_s18  }
  0x1e   : > { %1913 = sst [smem:[#allocation23_spill]] %s1256_s17  ;;  %p1892_p3 = scmp.eq.s32.totalorder %s1260_s18, 0 }
  0x1f   : > { %p1891_p4 = scmp.eq.s32.totalorder %s1384_s19, 0  ;;  %s694_s22 = sld [smem:[#allocation3 + $0x1]] }
  0x20   : > { %s74_s23 = sadd.s32 1, %s1244_s14  ;;  %p81_p5 = scmp.ne.s32.totalorder %s1244_s14, %s1240_s13 }
  0x21   : > { %p87_p6 = scmp.ne.s32.totalorder %s1240_s13, %s1236_s12  ;;  %s127_s24 = ssub.s32 %s1260_s18, %s1388_s21 }
  0x22   : > { %p1400_p7 = por %p81_p5, %p1892_p3  ;;  %p128_p8 = scmp.eq.s32.totalorder %s127_s24, 0 }
  0x23   : > { %p1406_p9 = por %p87_p6, %p1891_p4  ;;  %s130_s27 = sadd.s32 1, %s1220_s9 }
  0x24   : > { %s1412_s28 = scalar_select %p128_p8, %s1220_s9, %s130_s27  }
  0x25   : > { %s1915_s26 = scalar_select %p1406_p9, 1, 0 }
  0x26   : > { %1916 = sst [smem:[#allocation24_spill]] %s1412_s28  ;;  %s68_s29 = smul.u32 %s1260_s18, %s694_s22 }
  0x27   : > { %p140_p10 = scmp.ne.s32.totalorder %s1220_s9, %s1216_s8  ;;  %s70_s30 = smul.u32 %s694_s22, %s1388_s21 }
  0x28   : > { %p141_p11 = scmp.eq.s32.totalorder %s1384_s19, 1  ;;  %p146_p12 = scmp.ne.s32.totalorder %s1216_s8, %s1212_s7 }
  0x29   : > { %p147_p13 = scmp.eq.s32.totalorder %s1883_s20, 1  ;;  %s71_s12 = ssub.s32 %s68_s29, %s70_s30 }
  0x2a   : > { %p1423_p0 = por %p141_p11, %p140_p10  ;;  %p72_p1 = scmp.eq.s32.totalorder %s71_s12, 0 }
  0x2b   : > { %p1427_p2 = por %p147_p13, %p146_p12  ;;  %p1890_p6 = scmp.lt.s32.totalorder %s1260_s18, 2 }
  0x2c   : > { %s1917_s24 = scalar_select %p1423_p0, 1, 0 }
  0x2d   : > { %s1919_s27 = scalar_select %p1427_p2, 1, 0 }
  0x2e   : > { %1918 = sst [smem:[#allocation25_spill]] %s1917_s24  ;;  %s242_s28 = sand.u32 1, %s1260_s18  }
  0x2f   : > { %1920 = sst [smem:[#allocation26_spill]] %s1919_s27  ;;  %s244_s20 = sand.u32 1, %s1244_s14  }
  0x30   : > { %s1434_s22 = scalar_select %p72_p1, %s1244_s14, %s74_s23  }
  0x31   : > { %s703_s9 = sshll.u32 %s244_s20, 6  ;;  %s732_s7 = sshll.u32 %s68_s29, 10 }
  0x32   : > { %1921 = sst [smem:[#allocation27_spill]] %s1434_s22  ;;  %s246_s12 = scalar_lea.vmem [#allocation7], %s703_s9 }
  0x33   : > { %s1922_s2 = sld [smem:[#allocation30_spill]]  ;;  %s255_s24 = sshll.u32 %s246_s12, 4  ;;  %s1443_s24 = int_to_ptr.vmem [resolvable:$true] %s255_s24 }
  0x34   : > { %p1449_p8 = pnand %p1890_p6, %p1400_p7  ;;  %s1455_s6 = scalar_lea.sflag [#allocation8], %s242_s28 }
  0x36   : > { %p964_p13 = pneg %p1449_p8 }
  0x39   : > { %s1441_s4 = scalar_lea.hbm %s1922_s2, %s732_s7  ;;  %s967_s25 = scalar_lea.hbm %s1922_s2, 2048 }
  0x3a   : > { %s962_s7 = scalar_lea.hbm %s1441_s4, 1024  ;;  %p968_p7 = scmp.lt.u32.totalorder %s1441_s4, %s1922_s2 }
  0x3b   : > { %p963_p12 = scmp.ne.s32.totalorder %s1441_s4, %s962_s7  ;;  %p969_p6 = scmp.lt.u32.totalorder %s967_s25, %s962_s7 }
  0x3c   : > { %p971_p3 = scmp.lt.u32.totalorder %s962_s7, %s1441_s4 }
  0x3d   : > { %p965_p1 = pnand %p964_p13, %p963_p12  ;;  %p970_p4 = por %p969_p6, %p968_p7 }
  0x3f   : > { %p966_p5 = pneg %p965_p1  ;;  %p972_p10 = por %p971_p3, %p970_p4 }
  0x41   : > { %p973_p11 = pnand %p972_p10, %p966_p5 }
  0x43   : > { %976 = shalt.err (!%p973_p11)
}
  0x44   : > { %s977_s28 = scalar_lea.vmem %s1443_s24, 1024  ;;  %s1263_s12 = smov [#allocation7]  }
  0x45   : > { %p978_p12 = scmp.ne.s32.totalorder %s1443_s24, %s977_s28  ;;  %s982_s9 = sshll.u32 %s1263_s12, 4  ;;  %s983_s9 = int_to_ptr.vmem [resolvable:$false] %s982_s9 }
  0x46   : > { %s984_s20 = scalar_lea.vmem %s983_s9, 2048  ;;  %p985_p0 = scmp.lt.s32.totalorder %s1443_s24, %s983_s9 }
  0x47   : > { %p980_p1 = pnand %p978_p12, %p964_p13  ;;  %p986_p6 = scmp.lt.s32.totalorder %s984_s20, %s977_s28 }
  0x49   : > { %p981_p2 = pneg %p980_p1  ;;  %p987_p7 = por %p986_p6, %p985_p0 }
  0x4b   : > { %p988_p3 = pnand %p987_p7, %p981_p2 }
  0x4d   : > { %991 = shalt.err (!%p988_p3)
}
  0x4e   : > { %s1894_s7 = smov 128   ;;  %s1896_s25 = smov 8  }
  0x4f   : > { %755 = dma.hbm_to_vmem [thread:$0]  (!%p1449_p8), %s1441_s4, 1024, %s1443_s24, %s1455_s6, %s1894_s7, %s1894_s7, %s1896_s25  }
  0x50   : > { %p1924_p4 = scmp.lt.s32.totalorder %s1260_s18, 3  ;;  %p1925_p0 = scmp.ge.s32.totalorder %s1260_s18, 1 }
  0x51   : > { %s37_s30 = sld [smem:[#allocation3]]  ;;  %p51_p5 = scmp.ne.s32.totalorder %s1256_s17, %s1252_s16 }
  0x52   : > { %p1490_p2 = pnand %p1925_p0, %p1924_p4  ;;  %p57_p10 = scmp.ne.s32.totalorder %s1252_s16, %s1248_s15 }
  0x53   : > { %s219_s12 = sand.u32 1, %s1256_s17   ;;  %p1927_p11 = scmp.eq.s32.totalorder %s1260_s18, 0 }
  0x54   : > { %p1928_p12 = scmp.eq.s32.totalorder %s1384_s19, 0  ;;  %s700_s9 = sshll.u32 %s219_s12, 6 }
  0x55   : > { %p53_p13 = por %p1927_p11, %p51_p5  ;;  %p1930_p8 = scmp.lt.s32.totalorder %s1260_s18, 2 }
  0x56   : > { %p1504_p1 = por %p1928_p12, %p57_p10  ;;  %s223_s20 = scalar_lea.vmem [#allocation4], %s700_s9 }
  0x57   : > { %p1510_p6 = pnand %p1930_p8, %p53_p13  ;;  %s38_s24 = smul.u32 %s1260_s18, %s37_s30 }
  0x58   : > { %s1929_s23 = scalar_select %p1504_p1, 1, 0 }
  0x59   : > { %s232_s28 = sshll.u32 %s223_s20, 4  ;;  %s40_s15 = smul.u32 %s37_s30, %s1388_s21  ;;  %s1516_s28 = int_to_ptr.vmem [resolvable:$true] %s232_s28 }
  0x5a   : > { %s731_s7 = sshll.u32 %s38_s24, 10  ;;  %s1932_s1 = sld [smem:[#allocation29_spill]] }
  0x5b   : > { %s1518_s25 = ssub.s32 %s38_s24, %s40_s15  ;;  %s1526_s27 = scalar_lea.sflag [#allocation5], %s219_s12 }
  0x5c   : > { %p994_p4 = pneg %p1510_p6 }
  0x60   : > { %s1523_s14 = scalar_lea.hbm %s1932_s1, %s731_s7  ;;  %s997_s22 = scalar_lea.hbm %s1932_s1, 2048 }
  0x61   : > { %s992_s9 = scalar_lea.hbm %s1523_s14, 1024  ;;  %p998_p10 = scmp.lt.u32.totalorder %s1523_s14, %s1932_s1 }
  0x62   : > { %p993_p3 = scmp.ne.s32.totalorder %s1523_s14, %s992_s9  ;;  %p999_p11 = scmp.lt.u32.totalorder %s997_s22, %s992_s9 }
  0x63   : > { %p1001_p12 = scmp.lt.u32.totalorder %s992_s9, %s1523_s14 }
  0x64   : > { %p995_p0 = pnand %p994_p4, %p993_p3  ;;  %p1000_p13 = por %p999_p11, %p998_p10 }
  0x66   : > { %p996_p5 = pneg %p995_p0  ;;  %p1002_p8 = por %p1001_p12, %p1000_p13 }
  0x68   : > { %p1003_p7 = pnand %p1002_p8, %p996_p5 }
  0x6a   : > { %1006 = shalt.err (!%p1003_p7)
}
  0x6b   : > { %s1007_s12 = scalar_lea.vmem %s1516_s28, 1024  ;;  %s1266_s20 = smov [#allocation4]  }
  0x6c   : > { %p1008_p3 = scmp.ne.s32.totalorder %s1516_s28, %s1007_s12  ;;  %s1012_s15 = sshll.u32 %s1266_s20, 4  ;;  %s1013_s15 = int_to_ptr.vmem [resolvable:$false] %s1012_s15 }
  0x6d   : > { %s1014_s30 = scalar_lea.vmem %s1013_s15, 2048  ;;  %p1015_p1 = scmp.lt.s32.totalorder %s1516_s28, %s1013_s15 }
  0x6e   : > { %p1010_p0 = pnand %p1008_p3, %p994_p4  ;;  %p1016_p10 = scmp.lt.s32.totalorder %s1014_s30, %s1007_s12 }
  0x70   : > { %p1011_p9 = pneg %p1010_p0  ;;  %p1017_p11 = por %p1016_p10, %p1015_p1 }
  0x72   : > { %p1018_p13 = pnand %p1017_p11, %p1011_p9 }
  0x74   : > { %1021 = shalt.err (!%p1018_p13)
}
  0x75   : > { %s1933_s9 = smov 8   ;;  %s1934_s2 = smov 128  }
  0x76   : > { %752 = dma.hbm_to_vmem [thread:$0]  (!%p1510_p6), %s1523_s14, 1024, %s1516_s28, %s1526_s27, %s1934_s2, %s1934_s2, %s1933_s9  }
  0x77   : > { %s1935_s4 = sadd.s32 1, %s1256_s17  ;;  %p1936_p9 = scmp.eq.s32.totalorder %s1518_s25, 0 }
  0x78   : > { %s696_s7 = sld [smem:[#allocation3 + $0x2]]  ;;  %p111_p1 = scmp.ne.s32.totalorder %s1232_s11, %s1228_s0 }
  0x79   : > { %s1562_s22 = scalar_select %p1936_p9, %s1256_s17, %s1935_s4  }
  0x7a   : > { %p117_p7 = scmp.ne.s32.totalorder %s1228_s0, %s1224_s10  ;;  %s267_s24 = sand.u32 1, %s1232_s11  }
  0x7b   : > { %1937 = sst [smem:[#allocation28_spill]] %s1562_s22  ;;  %p1938_p4 = scmp.eq.s32.totalorder %s1260_s18, 0 }
  0x7c   : > { %p1939_p12 = scmp.eq.s32.totalorder %s1384_s19, 0  ;;  %s707_s15 = sshll.u32 %s267_s24, 6 }
  0x7d   : > { %p113_p5 = por %p111_p1, %p1938_p4  ;;  %p1941_p3 = scmp.lt.s32.totalorder %s1260_s18, 2 }
  0x7e   : > { %p1573_p8 = por %p117_p7, %p1939_p12  ;;  %s98_s27 = smul.u32 %s1260_s18, %s696_s7 }
  0x7f   : > { %p1580_p0 = pnand %p1941_p3, %p113_p5  ;;  %s269_s25 = scalar_lea.vmem [#allocation9], %s707_s15 }
  0x80   : > { %s1940_s12 = scalar_select %p1573_p8, 1, 0 }
  0x81   : > { %s278_s10 = sshll.u32 %s269_s25, 4  ;;  %s100_s28 = smul.u32 %s696_s7, %s1388_s21  ;;  %s1586_s10 = int_to_ptr.vmem [resolvable:$true] %s278_s10 }
  0x82   : > { %s733_s30 = sshll.u32 %s98_s27, 10  ;;  %s1943_s3 = sld [smem:[#allocation31_spill]] }
  0x83   : > { %s1588_s4 = ssub.s32 %s98_s27, %s100_s28  ;;  %p1024_p11 = pneg %p1580_p0 }
  0x88   : > { %s1593_s24 = scalar_lea.hbm %s1943_s3, %s733_s30  ;;  %s1027_s1 = scalar_lea.hbm %s1943_s3, 2048 }
  0x89   : > { %s1022_s20 = scalar_lea.hbm %s1593_s24, 1024  ;;  %p1028_p1 = scmp.lt.u32.totalorder %s1593_s24, %s1943_s3 }
  0x8a   : > { %p1023_p10 = scmp.ne.s32.totalorder %s1593_s24, %s1022_s20  ;;  %p1029_p7 = scmp.lt.u32.totalorder %s1027_s1, %s1022_s20 }
  0x8b   : > { %p1031_p5 = scmp.lt.u32.totalorder %s1022_s20, %s1593_s24 }
  0x8c   : > { %p1025_p13 = pnand %p1024_p11, %p1023_p10  ;;  %p1030_p4 = por %p1029_p7, %p1028_p1 }
  0x8e   : > { %p1026_p9 = pneg %p1025_p13  ;;  %p1032_p12 = por %p1031_p5, %p1030_p4 }
  0x90   : > { %p1033_p3 = pnand %p1032_p12, %p1026_p9 }
  0x92   : > { %1036 = shalt.err (!%p1033_p3)
}
  0x93   : > { %s1037_s25 = scalar_lea.vmem %s1586_s10, 1024  ;;  %s1267_s28 = smov [#allocation9]  }
  0x94   : > { %p1038_p10 = scmp.ne.s32.totalorder %s1586_s10, %s1037_s25  ;;  %s1042_s30 = sshll.u32 %s1267_s28, 4  ;;  %s1043_s30 = int_to_ptr.vmem [resolvable:$false] %s1042_s30 }
  0x95   : > { %s1044_s7 = scalar_lea.vmem %s1043_s30, 2048  ;;  %p1045_p8 = scmp.lt.s32.totalorder %s1586_s10, %s1043_s30 }
  0x96   : > { %p1040_p13 = pnand %p1038_p10, %p1024_p11  ;;  %p1046_p1 = scmp.lt.s32.totalorder %s1044_s7, %s1037_s25 }
  0x98   : > { %p1041_p6 = pneg %p1040_p13  ;;  %p1047_p7 = por %p1046_p1, %p1045_p8 }
  0x9a   : > { %p1048_p4 = pnand %p1047_p7, %p1041_p6 }
  0x9c   : > { %1051 = shalt.err (!%p1048_p4)
}
  0x9d   : > { %758 = dma.hbm_to_vmem [thread:$0]  (!%p1580_p0), %s1593_s24, 1024, %s1586_s10, %s1455_s6, %s1934_s2, %s1934_s2, %s1933_s9  }
  0x9e   : > { %s1944_s20 = sadd.s32 1, %s1232_s11  ;;  %p1945_p11 = scmp.eq.s32.totalorder %s1588_s4, 0 }
  0x9f   : > { %290 = sbr.rel (%p1490_p2) target bundleno = 274 (0x112), region = 32  ;;  %s292_s14 = sand.u32 (!%p1490_p2), 1, %s1252_s16  }
  0xa0   : > { %s1630_s15 = scalar_select %p1945_p11, %s1232_s11, %s1944_s20  }
  0xa1   : > { %s712_s1 = sshll.u32 (!%p1490_p2), %s292_s14, 6  ;;  %s293_s22 = scalar_lea.sflag (!%p1490_p2), [#allocation5], %s292_s14 }
  0xa2   : > { %s1635_s27 = scalar_lea.vmem (!%p1490_p2), [#allocation4], %s712_s1  ;;  %p1946_p8 = scmp.ne.s32.totalorder (!%p1490_p2), %s1929_s23, 0 }
  0xa6   : > { %1191 = dma.done.wait (%p1946_p8), %s293_s22, 1024  }
  0xa7   : > { %1193 = vsyncadd (%p1946_p8), %s293_s22, 4294966272  ;;  %s301_s6 = sand.u32 1, %s1384_s19   ;;  %s303_s9 = sand.u32 1, %s1240_s13  }
  0xa8   : > { %s713_s29 = sshll.u32 %s303_s9, 6  ;;  %s302_s2 = scalar_lea.sflag [#allocation8], %s301_s6 }
  0xa9   : > { %s1645_s10 = scalar_lea.vmem [#allocation7], %s713_s29  ;;  %p1947_p2 = scmp.ne.s32.totalorder %s1915_s26, 0 }
  0xab   : > { %1195 = dma.done.wait (%p1947_p2), %s302_s2, 1024  }
  0xac   : > { %1197 = vsyncadd (%p1947_p2), %s302_s2, 4294966272  ;;  %s312_s23 = sand.u32 1, %s1228_s0   ;;  %p1948_p0 = scmp.ne.s32.totalorder %s1940_s12, 0 }
  0xad   : > { %s714_s4 = sshll.u32 %s312_s23, 6 }
  0xae   : > { %s1652_s24 = scalar_lea.vmem [#allocation9], %s714_s4 }
  0xaf   : > { %1199 = dma.done.wait (%p1948_p0), %s302_s2, 1024  }
  0xb0   : > { %1201 = vsyncadd (%p1948_p0), %s302_s2, 4294966272  ;;  %s1903_s25 = sand.u32 1, %s1216_s8   ;;  %s718_s26 = sld [smem:[#allocation3 + $0x1]] }
  0xb1   : > { %s715_s28 = sshll.u32 %s1903_s25, 6  ;;  %s381_s20 = sld [smem:[#allocation3]] }
  0xb2   : > { %s353_s30 = scalar_lea.vmem [#allocation11], %s715_s28  ;;  %s1663_s14 = scalar_lea.vmem [#allocation10], %s715_s28 }
  0xb3   : > { %s500_s7 = sshll.u32 %s353_s30, 4  ;;  %s484_s12 = sshll.u32 %s1663_s14, 4  ;;  %s1661_s7 = int_to_ptr.vmem [resolvable:$true] %s500_s7  ;;  %s1721_s12 = int_to_ptr.vmem [resolvable:$true] %s484_s12 }
  0xb4   : > { %s1666_s1 = sld [smem:[#allocation3 + $0x2]]  ;;  %s1668_s22 = scalar_lea.vmem [#allocation13], %s715_s28 }
  0xb5   : > { %s516_s9 = sshll.u32 %s1668_s22, 4  ;;  %s1672_s29 = sshll.u32 %s1384_s19, 10  ;;  %s1733_s9 = int_to_ptr.vmem [resolvable:$true] %s516_s9 }
  0xb6   : > { %p411_p6 = scmp.ne.s32.totalorder %s718_s26, 0  ;;  %s1703_s28 = scalar_lea.hbm %s1881_s5, %s1672_s29 }
  0xb7   : > { %p382_p9 = scmp.ne.s32.totalorder %s381_s20, 0  ;;  %s1951_s4 = sld [smem:[#allocation33_spill]] }
  0xb8   : > { %s881_s2 = scalar_select %p411_p6, 255, 0 }
  0xb9   : > { %s905_s23 = scalar_select %p382_p9, 255, 0 }
  0xba   : > { %v882_v0 = vld [vmem:[%s1645_s10] sm:%s881_s2]  ;;  %v885_v1 = vld [vmem:[%s1645_s10 + $0x8] sm:%s881_s2]  ;;  %p440_p5 = scmp.ne.s32.totalorder %s1666_s1, 0  ;;  %s1950_s1 = sld [smem:[#allocation32_spill]] }
  0xbb   : > { %423 = vst [vmem:[%s353_s30] sm:$0xff] %v882_v0  ;;  %424 = vst [vmem:[%s353_s30 + $0x8] sm:$0xff] %v885_v1  ;;  %v888_v2 = vld [vmem:[%s1645_s10 + $0x10] sm:%s881_s2]  ;;  %s1052_s3 = scalar_lea.vmem %s1661_s7, 1024 }
  0xbc   : > { %425 = vst [vmem:[%s353_s30 + $0x10] sm:$0xff] %v888_v2  ;;  %v891_v3 = vld [vmem:[%s1645_s10 + $0x18] sm:%s881_s2]  ;;  %s929_s26 = scalar_select %p440_p5, 255, 0 }
  0xbd   : > { %426 = vst [vmem:[%s353_s30 + $0x18] sm:$0xff] %v891_v3  ;;  %v894_v4 = vld [vmem:[%s1645_s10 + $0x20] sm:%s881_s2]  ;;  %s1741_s25 = scalar_lea.hbm %s1951_s4, %s1672_s29  ;;  %p1053_p12 = scmp.ne.s32.totalorder %s1661_s7, %s1052_s3 }
  0xbe   : > { %427 = vst [vmem:[%s353_s30 + $0x20] sm:$0xff] %v894_v4  ;;  %v897_v5 = vld [vmem:[%s1645_s10 + $0x28] sm:%s881_s2] }
  0xbf   : > { %428 = vst [vmem:[%s353_s30 + $0x28] sm:$0xff] %v897_v5  ;;  %v900_v6 = vld [vmem:[%s1645_s10 + $0x30] sm:%s881_s2] }
  0xc0   : > { %429 = vst [vmem:[%s353_s30 + $0x30] sm:$0xff] %v900_v6  ;;  %v903_v7 = vld [vmem:[%s1645_s10 + $0x38] sm:%s881_s2]  ;;  %s1729_s2 = scalar_lea.hbm %s1950_s1, %s1672_s29 }
  0xc1   : > { %430 = vst [vmem:[%s353_s30 + $0x38] sm:$0xff] %v903_v7  ;;  %v906_v8 = vld [vmem:[%s1635_s27] sm:%s905_s23]  ;;  %s1268_s30 = smov [#allocation11]  }
  0xc2   : > { %394 = vst [vmem:[%s1663_s14] sm:$0xff] %v906_v8  ;;  %v909_v9 = vld [vmem:[%s1635_s27 + $0x8] sm:%s905_s23]  ;;  %s1056_s20 = sshll.u32 %s1268_s30, 4  ;;  %s1057_s20 = int_to_ptr.vmem [resolvable:$false] %s1056_s20 }
  0xc3   : > { %395 = vst [vmem:[%s1663_s14 + $0x8] sm:$0xff] %v909_v9  ;;  %v912_v10 = vld [vmem:[%s1635_s27 + $0x10] sm:%s905_s23]  ;;  %s1058_s17 = scalar_lea.vmem %s1057_s20, 2048  ;;  %p1059_p1 = scmp.lt.s32.totalorder %s1661_s7, %s1057_s20 }
  0xc4   : > { %396 = vst [vmem:[%s1663_s14 + $0x10] sm:$0xff] %v912_v10  ;;  %v915_v11 = vld [vmem:[%s1635_s27 + $0x18] sm:%s905_s23]  ;;  %p1060_p7 = scmp.lt.s32.totalorder %s1058_s17, %s1052_s3 }
  0xc5   : > { %397 = vst [vmem:[%s1663_s14 + $0x18] sm:$0xff] %v915_v11  ;;  %v918_v12 = vld [vmem:[%s1635_s27 + $0x20] sm:%s905_s23] }
  0xc6   : > { %398 = vst [vmem:[%s1663_s14 + $0x20] sm:$0xff] %v918_v12  ;;  %v921_v13 = vld [vmem:[%s1635_s27 + $0x28] sm:%s905_s23]  ;;  %p1061_p4 = por %p1060_p7, %p1059_p1 }
  0xc7   : > { %399 = vst [vmem:[%s1663_s14 + $0x28] sm:$0xff] %v921_v13  ;;  %v924_v14 = vld [vmem:[%s1635_s27 + $0x30] sm:%s905_s23] }
  0xc8   : > { %400 = vst [vmem:[%s1663_s14 + $0x30] sm:$0xff] %v924_v14  ;;  %v927_v15 = vld [vmem:[%s1635_s27 + $0x38] sm:%s905_s23]  ;;  %s1949_s27 = sld [smem:[#allocation25_spill]] }
  0xc9   : > { %401 = vst [vmem:[%s1663_s14 + $0x38] sm:$0xff] %v927_v15  ;;  %v930_v16 = vld [vmem:[%s1652_s24] sm:%s929_s26]  ;;  %s1746_s14 = scalar_lea.sflag [#allocation12], %s301_s6 }
  0xca   : > { %452 = vst [vmem:[%s1668_s22] sm:$0xff] %v930_v16  ;;  %v933_v17 = vld [vmem:[%s1652_s24 + $0x8] sm:%s929_s26] }
  0xcb   : > { %453 = vst [vmem:[%s1668_s22 + $0x8] sm:$0xff] %v933_v17  ;;  %v936_v18 = vld [vmem:[%s1652_s24 + $0x10] sm:%s929_s26] }
  0xcc   : > { %454 = vst [vmem:[%s1668_s22 + $0x10] sm:$0xff] %v936_v18  ;;  %v939_v19 = vld [vmem:[%s1652_s24 + $0x18] sm:%s929_s26] }
  0xcd   : > { %455 = vst [vmem:[%s1668_s22 + $0x18] sm:$0xff] %v939_v19  ;;  %v942_v20 = vld [vmem:[%s1652_s24 + $0x20] sm:%s929_s26] }
  0xce   : > { %456 = vst [vmem:[%s1668_s22 + $0x20] sm:$0xff] %v942_v20  ;;  %v945_v21 = vld [vmem:[%s1652_s24 + $0x28] sm:%s929_s26]  ;;  %p1952_p3 = scmp.ne.s32.totalorder %s1949_s27, 0 }
  0xcf   : > { %457 = vst [vmem:[%s1668_s22 + $0x28] sm:$0xff] %v945_v21  ;;  %v948_v22 = vld [vmem:[%s1652_s24 + $0x30] sm:%s929_s26] }
  0xd0   : > { %458 = vst [vmem:[%s1668_s22 + $0x30] sm:$0xff] %v948_v22  ;;  %v951_v23 = vld [vmem:[%s1652_s24 + $0x38] sm:%s929_s26]  ;;  %p1054_p10 = pnand %p1053_p12, %p1952_p3 }
  0xd1   : > { %459 = vst [vmem:[%s1668_s22 + $0x38] sm:$0xff] %v951_v23 }
  0xd2   : > { %p1055_p13 = pneg %p1054_p10 }
  0xd4   : > { %p1062_p11 = pnand %p1061_p4, %p1055_p13 }
  0xd6   : > { %1065 = shalt.err (!%p1062_p11)
}
  0xd7   : > { %s1066_s19 = scalar_lea.hbm %s1703_s28, 1024  ;;  %s1070_s22 = scalar_lea.hbm %s1881_s5, 2048 }
  0xd8   : > { %p1067_p8 = scmp.ne.s32.totalorder %s1703_s28, %s1066_s19  ;;  %p1071_p6 = scmp.lt.u32.totalorder %s1703_s28, %s1881_s5 }
  0xd9   : > { %p1072_p9 = scmp.lt.u32.totalorder %s1070_s22, %s1066_s19  ;;  %p1074_p12 = scmp.lt.u32.totalorder %s1066_s19, %s1703_s28 }
  0xda   : > { %p1068_p2 = pnand %p1067_p8, %p1952_p3 }
  0xdb   : > { %p1073_p5 = por %p1072_p9, %p1071_p6 }
  0xdc   : > { %p1069_p0 = pneg %p1068_p2 }
  0xdd   : > { %p1075_p10 = por %p1074_p12, %p1073_p5 }
  0xdf   : > { %p1076_p13 = pnand %p1075_p10, %p1069_p0 }
  0xe1   : > { %1079 = shalt.err (!%p1076_p13)
}
  0xe2   : > { %s1269_s3 = smov 128   ;;  %s1270_s17 = smov 8  }
  0xe3   : > { %744 = dma.vmem_to_hbm [thread:$0]  (%p1952_p3), %s1661_s7, 1024, %s1703_s28, %s1746_s14, %s1269_s3, %s1269_s3, %s1270_s17  }
  0xe4   : > { %s1953_s23 = sand.u32 1, %s1216_s8   ;;  %s1080_s30 = scalar_lea.vmem %s1721_s12, 1024 }
  0xe5   : > { %s1775_s10 = scalar_lea.sflag [#allocation6], %s1953_s23  ;;  %p1081_p1 = scmp.ne.s32.totalorder %s1721_s12, %s1080_s30 }
  0xe6   : > { %s1271_s20 = smov [#allocation10]  }
  0xe7   : > { %p1082_p7 = pnand %p1081_p1, %p1952_p3  ;;  %s1084_s19 = sshll.u32 %s1271_s20, 4  ;;  %s1085_s19 = int_to_ptr.vmem [resolvable:$false] %s1084_s19 }
  0xe8   : > { %s1086_s6 = scalar_lea.vmem %s1085_s19, 2048  ;;  %p1087_p11 = scmp.lt.s32.totalorder %s1721_s12, %s1085_s19 }
  0xe9   : > { %p1083_p4 = pneg %p1082_p7  ;;  %p1088_p8 = scmp.lt.s32.totalorder %s1086_s6, %s1080_s30 }
  0xeb   : > { %p1089_p2 = por %p1088_p8, %p1087_p11 }
  0xed   : > { %p1090_p0 = pnand %p1089_p2, %p1083_p4 }
  0xef   : > { %1093 = shalt.err (!%p1090_p0)
}
  0xf0   : > { %s1094_s7 = scalar_lea.hbm %s1729_s2, 1024  ;;  %s1098_s22 = scalar_lea.hbm %s1950_s1, 2048 }
  0xf1   : > { %p1095_p6 = scmp.ne.s32.totalorder %s1729_s2, %s1094_s7  ;;  %p1099_p12 = scmp.lt.u32.totalorder %s1729_s2, %s1950_s1 }
  0xf2   : > { %p1100_p10 = scmp.lt.u32.totalorder %s1098_s22, %s1094_s7  ;;  %p1102_p1 = scmp.lt.u32.totalorder %s1094_s7, %s1729_s2 }
  0xf3   : > { %p1096_p9 = pnand %p1095_p6, %p1952_p3 }
  0xf4   : > { %p1101_p13 = por %p1100_p10, %p1099_p12 }
  0xf5   : > { %p1097_p5 = pneg %p1096_p9 }
  0xf6   : > { %p1103_p7 = por %p1102_p1, %p1101_p13 }
  0xf8   : > { %p1104_p4 = pnand %p1103_p7, %p1097_p5 }
  0xfa   : > { %1107 = shalt.err (!%p1104_p4)
}
  0xfb   : > { %743 = dma.vmem_to_hbm [thread:$0]  (%p1952_p3), %s1721_s12, 1024, %s1729_s2, %s1775_s10, %s1269_s3, %s1269_s3, %s1270_s17  }
  0xfc   : > { %s1108_s23 = scalar_lea.vmem %s1733_s9, 1024  ;;  %s1272_s30 = smov [#allocation13]  }
  0xfd   : > { %p1109_p11 = scmp.ne.s32.totalorder %s1733_s9, %s1108_s23  ;;  %s1112_s20 = sshll.u32 %s1272_s30, 4  ;;  %s1113_s20 = int_to_ptr.vmem [resolvable:$false] %s1112_s20 }
  0xfe   : > { %s1114_s19 = scalar_lea.vmem %s1113_s20, 2048  ;;  %p1115_p0 = scmp.lt.s32.totalorder %s1733_s9, %s1113_s20 }
  0xff   : > { %p1110_p8 = pnand %p1109_p11, %p1952_p3  ;;  %p1116_p6 = scmp.lt.s32.totalorder %s1114_s19, %s1108_s23 }
 0x101   : > { %p1111_p2 = pneg %p1110_p8  ;;  %p1117_p9 = por %p1116_p6, %p1115_p0 }
 0x103   : > { %p1118_p5 = pnand %p1117_p9, %p1111_p2 }
 0x105   : > { %1121 = shalt.err (!%p1118_p5)
}
 0x106   : > { %s1122_s12 = scalar_lea.hbm %s1741_s25, 1024  ;;  %s1126_s6 = scalar_lea.hbm %s1951_s4, 2048 }
 0x107   : > { %p1123_p12 = scmp.ne.s32.totalorder %s1741_s25, %s1122_s12  ;;  %p1127_p1 = scmp.lt.u32.totalorder %s1741_s25, %s1951_s4 }
 0x108   : > { %p1128_p7 = scmp.lt.u32.totalorder %s1126_s6, %s1122_s12  ;;  %p1130_p11 = scmp.lt.u32.totalorder %s1122_s12, %s1741_s25 }
 0x109   : > { %p1124_p10 = pnand %p1123_p12, %p1952_p3 }
 0x10a   : > { %p1129_p4 = por %p1128_p7, %p1127_p1 }
 0x10b   : > { %p1125_p13 = pneg %p1124_p10 }
 0x10c   : > { %p1131_p8 = por %p1130_p11, %p1129_p4 }
 0x10e   : > { %p1132_p2 = pnand %p1131_p8, %p1125_p13 }
 0x110   : > { %1135 = shalt.err (!%p1132_p2)
}
 0x111   : > { %745 = dma.vmem_to_hbm [thread:$0]  (%p1952_p3), %s1733_s9, 1024, %s1741_s25, %s1746_s14, %s1269_s3, %s1269_s3, %s1270_s17  }
 0x112 PF: > { %s1954_s24 = sld [smem:[#allocation20_spill]]  ;;  %s1955_s22 = sld [smem:[#allocation26_spill]] }
 0x113   : > { %p1957_p6 = scmp.ge.s32.totalorder %s1260_s18, 2 }
 0x118   : > { %s531_s29 = sand.u32 1, %s1954_s24   ;;  %p1956_p0 = scmp.ne.s32.totalorder %s1955_s22, 0 }
 0x119   : > { %s532_s26 = scalar_lea.sflag [#allocation6], %s531_s29 }
 0x11a   : > { %p760_p9 = pnand %p1957_p6, %p1956_p0 }
 0x11c   : > { %1203 = dma.done.wait (!%p760_p9), %s532_s26, 1024  }
 0x11d   : > { %1205 = vsyncadd (!%p760_p9), %s532_s26, 4294966272  ;;  %s1958_s27 = sadd.s32 4294967294, %s1260_s18  }
 0x11e   : > { %s540_s23 = sand.u32 1, %s1958_s27  }
 0x11f   : > { %s541_s30 = scalar_lea.sflag [#allocation12], %s540_s23 }
 0x120   : > { %1207 = dma.done.wait (!%p760_p9), %s541_s30, 2048  }
 0x121   : > { %1209 = vsyncadd (!%p760_p9), %s541_s30, 4294965248  ;;  %s1959_s25 = sld [smem:[#allocation21_spill]]  ;;  %s1960_s9 = sld [smem:[#allocation24_spill]] }
 0x122   : > { %s1961_s14 = sld [smem:[#allocation22_spill]]  ;;  %s1962_s3 = sld [smem:[#allocation27_spill]] }
 0x123   : > { %s1963_s17 = sld [smem:[#allocation23_spill]]  ;;  %s1964_s20 = sld [smem:[#allocation28_spill]] }
 0x124   : > { %p30_p3 = scmp.ge.s32.totalorder %s1388_s21, 4   ;;  %s1965_s7 = smov %s1216_s8 }
 0x125   : > { %s1967_s10 = smov %s1228_s0  ;;  %s1968_s0 = smov %s1232_s11 }
 0x126   : > { %s1969_s11 = smov %s1630_s15  ;;  %s1970_s12 = smov %s1240_s13 }
 0x127   : > { %s1966_s8 = smov %s1959_s25  ;;  %s1973_s15 = smov %s1252_s16 }
 0x128   : > { %s1971_s13 = smov %s1961_s14  ;;  %s1972_s14 = smov %s1962_s3 }
 0x129   : > { %s1974_s16 = smov %s1963_s17  ;;  %s1975_s17 = smov %s1964_s20 }
 0x12a   : > { %s1976_s18 = smov %s1388_s21  ;;  %32 = sbr.rel (!%p30_p3) target bundleno = 27 (0x1b), region = 133 }
 0x131   :  { %555 = vsyncpa [#allocation5], 1 }
 0x132   :  { %557 = vsyncpa [#allocation5 + $0x1], 1 }
 0x133   :  { %558 = vsyncpa [#allocation8], 1 }
 0x134   :  { %560 = vsyncpa [#allocation8 + $0x1], 1 }
 0x135   :  { %561 = vsyncpa [#allocation6], 1 }
 0x136   :  { %563 = vsyncpa [#allocation6 + $0x1], 1 }
 0x137   :  { %564 = vsyncpa [#allocation12], 1 }
 0x138   :  { %566 = vsyncpa [#allocation12 + $0x1], 1 }

</bundles_post_ra>
